<compile_context>
chip_gen: v6e
topology: v6e:2x2x1
jax: 0.10.0
libtpu: 0.0.40
codegen_flags: <defaults>
</compile_context>

<pallas_src>
import functools

import jax
import jax.numpy as jnp
from jax.experimental import pallas as pl
from jax.experimental.pallas import tpu as pltpu


def _default_act_dtype():
    """bf16 activations on v6e/v7x (bf16-capable VPU/EUP); f32 elsewhere."""
    try:
        kind = jax.devices()[0].device_kind.lower()
    except Exception:
        kind = ""
    return jnp.bfloat16 if ("v6" in kind or "v7" in kind) else jnp.float32


def catmodel_kernel(
    emb_ref, x2_ref,
    w1, b1, w2, b2,
    w3, b3, w4, b4, w41, b41,
    w5a, w5b, b5, w6, b6, w7, b7, w8t, b8,
    out_ref,
    *, act_dtype,
):
    f32 = jnp.float32
    bf16 = jnp.bfloat16

    def swish_to_bf16(pre_f32):
        # swish in act_dtype (bf16 on v6e/v7x halves EUP/VALU work; f32 on
        # v5e), result returned in bf16 ready for the next MXU matmul.
        a = pre_f32.astype(act_dtype)
        return (a * jax.nn.sigmoid(a)).astype(bf16)

    # ---- categorical branch -------------------------------------------------
    x1 = emb_ref[...]                                                    # (TM,32) bf16
    h = swish_to_bf16(jnp.dot(x1, w1[...], preferred_element_type=f32) + b1[...])   # 64
    x1_h2 = jnp.dot(h, w2[...], preferred_element_type=f32) + b2[...]    # (TM,32) f32
    # reference overwrites the swish with dropout(x_1_h2) -> identity at eval:
    x1_g = x1_h2.astype(bf16)

    # ---- continuous branch --------------------------------------------------
    x2 = x2_ref[...].astype(bf16)        # f32 from HBM -> bf16 on VPU (hidden under MXU)
    h = swish_to_bf16(jnp.dot(x2, w3[...], preferred_element_type=f32) + b3[...])    # 256
    h = swish_to_bf16(jnp.dot(h, w4[...], preferred_element_type=f32) + b4[...])     # 128
    x2_h3 = swish_to_bf16(jnp.dot(h, w41[...], preferred_element_type=f32) + b41[...])  # 64

    # ---- merge: cat((x1_g, x2_h3), -1) @ W5 == x1_g @ W5[:32] + x2_h3 @ W5[32:]
    y = swish_to_bf16(jnp.dot(x1_g, w5a[...], preferred_element_type=f32)
                      + jnp.dot(x2_h3, w5b[...], preferred_element_type=f32)
                      + b5[...])                                          # 64
    y = swish_to_bf16(jnp.dot(y, w6[...], preferred_element_type=f32) + b6[...])      # 32
    y = swish_to_bf16(jnp.dot(y, w7[...], preferred_element_type=f32) + b7[...])      # 16

    # Final 16->1 layer on the VPU: a 1-output-lane MXU matmul is pure drain
    # cost, so do broadcast-multiply + lane reduce instead (f32 accumulate).
    out_ref[...] = jnp.sum(y * w8t[...], axis=-1, keepdims=True) + b8[...]   # (TM,1) f32


def init_params(key):
    """Deterministic parameter init.  Weights stored as (in, out), f32."""
    dims = {
        "emb": (3774, 32),
        "w1": (32, 64), "w2": (64, 32),
        "w3": (300, 256), "w4": (256, 128), "w41": (128, 64),
        "w5": (96, 64), "w6": (64, 32), "w7": (32, 16), "w8": (16, 1),
    }
    params = {}
    for i, (name, shape) in enumerate(dims.items()):
        k = jax.random.fold_in(key, i)
        fan_in = shape[0]
        params[name] = (jax.random.normal(k, shape, jnp.float32)
                        * (1.0 / jnp.sqrt(jnp.float32(fan_in))))
        if name != "emb":
            out = shape[1]
            params["b" + name[1:]] = jnp.zeros((1, out), jnp.float32)
    return params


@functools.partial(jax.jit, static_argnames=("tm", "act_dtype"))
def catmodel_forward(x_1, x_2, params, tm=2048, act_dtype=None):
    if act_dtype is None:
        act_dtype = _default_act_dtype()   # resolved at trace time

    B, S = x_1.shape
    N = B * S
    f32, bf16 = jnp.float32, jnp.bfloat16

    # Row tile: multiple of 8.  Capped so (a) tiny inputs are not over-padded
    # and (b) the "parallel" grid axis keeps >= 2 steps so both v7x
    # TensorCores get work (costs nothing on single-TC v5e/v6e).
    tm_two_core_cap = max(128, (((N + 1) // 2 + 127) // 128) * 128)
    tm_eff = max(8, min(tm, tm_two_core_cap, ((N + 7) // 8) * 8))
    grid = pl.cdiv(N, tm_eff)   # partial last block handled by Pallas
                                # (row-wise compute only, so garbage tail rows
                                #  never contaminate valid rows; OOB output
                                #  writes are masked).

    # Embedding with max_norm=32 renorm: renorm the whole table once (same
    # forward values as torch's per-access renorm), cast to bf16, gather.
    # TODO(synk): fold the gather into the kernel (3774x32 bf16 table fits
    # VMEM) if the in-kernel gather lowers efficiently; kept as XLA glue.
    table = params["emb"].astype(f32)
    norms = jnp.sqrt(jnp.sum(table * table, axis=-1, keepdims=True))
    table = table * jnp.minimum(1.0, 32.0 / jnp.maximum(norms, 1e-7))
    rows = jnp.take(table.astype(bf16), x_1.reshape(-1).astype(jnp.int32),
                    axis=0)                                             # (N,32) bf16

    # x_2 fed as f32; the bf16 cast happens in-kernel so the wrapper does not
    # pay an extra HBM pass over the widest tensor.
    x2_flat = x_2.reshape(N, 300).astype(f32)

    # Split the post-concat linear5 weight into its two contributing blocks.
    w5a = params["w5"][:32, :].astype(bf16)
    w5b = params["w5"][32:, :].astype(bf16)
    w8t = params["w8"].T.astype(f32)                                    # (1,16) for the VPU

    weight_args = [
        params["w1"].astype(bf16), params["b1"],
        params["w2"].astype(bf16), params["b2"],
        params["w3"].astype(bf16), params["b3"],
        params["w4"].astype(bf16), params["b4"],
        params["w41"].astype(bf16), params["b41"],
        w5a, w5b, params["b5"],
        params["w6"].astype(bf16), params["b6"],
        params["w7"].astype(bf16), params["b7"],
        w8t, params["b8"],
    ]

    def full_spec(arr):
        return pl.BlockSpec(arr.shape, lambda i: (0,) * arr.ndim)

    in_specs = [
        pl.BlockSpec((tm_eff, 32), lambda i: (i, 0)),
        pl.BlockSpec((tm_eff, 300), lambda i: (i, 0)),
    ] + [full_spec(a) for a in weight_args]

    flops_per_row = 2 * (32 * 64 + 64 * 32 + 300 * 256 + 256 * 128
                         + 128 * 64 + 96 * 64 + 64 * 32 + 32 * 16 + 16 * 1)
    trans_per_row = 64 + 256 + 128 + 64 + 64 + 32 + 16
    weight_bytes = sum(int(a.size) * a.dtype.itemsize for a in weight_args)
    cost = pl.CostEstimate(
        flops=flops_per_row * N,
        transcendentals=trans_per_row * N,
        bytes_accessed=N * (32 * 2 + 300 * 4 + 4) + weight_bytes,
    )

    out = pl.pallas_call(
        functools.partial(catmodel_kernel, act_dtype=act_dtype),
        out_shape=jax.ShapeDtypeStruct((N, 1), f32),
        grid_spec=pltpu.PrefetchScalarGridSpec(
            num_scalar_prefetch=0,
            grid=(grid,),
            in_specs=in_specs,
            out_specs=pl.BlockSpec((tm_eff, 1), lambda i: (i, 0)),
        ),
        compiler_params=pltpu.CompilerParams(
            dimension_semantics=("parallel",),
            # f32 x2 tiles at tm=2048 (~2.4 MB x 2 buffers) plus f32
            # intermediates exceed v5e's 16 MiB default scoped VMEM; 48 MiB
            # is comfortably under physical VMEM on v5e/v6e (128 MiB) and
            # v7x (64 MiB).
            vmem_limit_bytes=48 * 1024 * 1024,
        ),
        cost_estimate=cost,
    )(rows, x2_flat, *weight_args)

    return out.reshape(B, S, 1)


def reference_forward(x_1, x_2, params):
    """Pure-JAX f32 reference mirroring the PyTorch forward (eval mode)."""
    f32 = jnp.float32
    sw = lambda t: t * jax.nn.sigmoid(t)
    table = params["emb"].astype(f32)
    norms = jnp.sqrt(jnp.sum(table * table, axis=-1, keepdims=True))
    table = table * jnp.minimum(1.0, 32.0 / jnp.maximum(norms, 1e-7))
    x1v = jnp.take(table, x_1.astype(jnp.int32), axis=0)                # (B,S,32)
    h = sw(x1v @ params["w1"] + params["b1"])
    x1_h2 = h @ params["w2"] + params["b2"]
    x1_g = x1_h2                       # dropout(x_1_h2) overwrites the swish
    h2 = sw(x_2 @ params["w3"] + params["b3"])
    h2 = sw(h2 @ params["w4"] + params["b4"])
    x2_h3 = sw(h2 @ params["w41"] + params["b41"])
    y = sw(jnp.concatenate([x1_g, x2_h3], axis=-1) @ params["w5"] + params["b5"])
    y = sw(y @ params["w6"] + params["b6"])
    y = sw(y @ params["w7"] + params["b7"])
    return y @ params["w8"] + params["b8"]


if __name__ == "__main__":
    key = jax.random.PRNGKey(0)
    params = init_params(jax.random.fold_in(key, 100))

    ok = True
    # Second shape exercises the partial-last-block path (N=150, tile=128).
    for i, (B, S) in enumerate(((2, 8), (5, 30))):
        x_1 = jax.random.randint(jax.random.fold_in(key, 2 * i + 1), (B, S),
                                 0, 3774, dtype=jnp.int32)
        x_2 = jax.random.normal(jax.random.fold_in(key, 2 * i + 2),
                                (B, S, 300), jnp.float32)
        y = catmodel_forward(x_1, x_2, params)
        jax.block_until_ready(y)
        y_ref = reference_forward(x_1, x_2, params)
        ok = ok and (y.shape == (B, S, 1))
        ok = ok and bool(jnp.all(jnp.isfinite(y)))
        ok = ok and bool(jnp.allclose(y, y_ref, rtol=5e-2, atol=5e-2))
    assert ok
    print("KERNEL_OK")
</pallas_src>

<mosaic_0001>
module attributes {stable_mosaic.version = 11 : i64} {
  func.func @catmodel_kernel(%arg0: i32, %arg1: memref<16x32xbf16, #tpu.memory_space<vmem>>, %arg2: memref<16x300xf32, #tpu.memory_space<vmem>>, %arg3: memref<32x64xbf16, #tpu.memory_space<vmem>>, %arg4: memref<1x64xf32, #tpu.memory_space<vmem>>, %arg5: memref<64x32xbf16, #tpu.memory_space<vmem>>, %arg6: memref<1x32xf32, #tpu.memory_space<vmem>>, %arg7: memref<300x256xbf16, #tpu.memory_space<vmem>>, %arg8: memref<1x256xf32, #tpu.memory_space<vmem>>, %arg9: memref<256x128xbf16, #tpu.memory_space<vmem>>, %arg10: memref<1x128xf32, #tpu.memory_space<vmem>>, %arg11: memref<128x64xbf16, #tpu.memory_space<vmem>>, %arg12: memref<1x64xf32, #tpu.memory_space<vmem>>, %arg13: memref<32x64xbf16, #tpu.memory_space<vmem>>, %arg14: memref<64x64xbf16, #tpu.memory_space<vmem>>, %arg15: memref<1x64xf32, #tpu.memory_space<vmem>>, %arg16: memref<64x32xbf16, #tpu.memory_space<vmem>>, %arg17: memref<1x32xf32, #tpu.memory_space<vmem>>, %arg18: memref<32x16xbf16, #tpu.memory_space<vmem>>, %arg19: memref<1x16xf32, #tpu.memory_space<vmem>>, %arg20: memref<1x16xf32, #tpu.memory_space<vmem>>, %arg21: memref<1x1xf32, #tpu.memory_space<vmem>>, %arg22: memref<16x1xf32, #tpu.memory_space<vmem>>) attributes {dimension_semantics = [#tpu.dimension_semantics<parallel>], iteration_bounds = array<i64: 1>, scalar_prefetch = 0 : i64, scratch_operands = 0 : i64, tpu.core_type = #tpu.core_type<tc>, window_params = [{transform_indices = @transform_0, window_bounds = array<i64: 16, 32>}, {transform_indices = @transform_1, window_bounds = array<i64: 16, 300>}, {pipeline_mode = #tpu.pipeline_mode<synchronous>, transform_indices = @transform_2, window_bounds = array<i64: 32, 64>}, {pipeline_mode = #tpu.pipeline_mode<synchronous>, transform_indices = @transform_3, window_bounds = array<i64: 1, 64>}, {pipeline_mode = #tpu.pipeline_mode<synchronous>, transform_indices = @transform_4, window_bounds = array<i64: 64, 32>}, {pipeline_mode = #tpu.pipeline_mode<synchronous>, transform_indices = @transform_5, window_bounds = array<i64: 1, 32>}, {pipeline_mode = #tpu.pipeline_mode<synchronous>, transform_indices = @transform_6, window_bounds = array<i64: 300, 256>}, {pipeline_mode = #tpu.pipeline_mode<synchronous>, transform_indices = @transform_7, window_bounds = array<i64: 1, 256>}, {pipeline_mode = #tpu.pipeline_mode<synchronous>, transform_indices = @transform_8, window_bounds = array<i64: 256, 128>}, {pipeline_mode = #tpu.pipeline_mode<synchronous>, transform_indices = @transform_9, window_bounds = array<i64: 1, 128>}, {pipeline_mode = #tpu.pipeline_mode<synchronous>, transform_indices = @transform_10, window_bounds = array<i64: 128, 64>}, {pipeline_mode = #tpu.pipeline_mode<synchronous>, transform_indices = @transform_11, window_bounds = array<i64: 1, 64>}, {pipeline_mode = #tpu.pipeline_mode<synchronous>, transform_indices = @transform_12, window_bounds = array<i64: 32, 64>}, {pipeline_mode = #tpu.pipeline_mode<synchronous>, transform_indices = @transform_13, window_bounds = array<i64: 64, 64>}, {pipeline_mode = #tpu.pipeline_mode<synchronous>, transform_indices = @transform_14, window_bounds = array<i64: 1, 64>}, {pipeline_mode = #tpu.pipeline_mode<synchronous>, transform_indices = @transform_15, window_bounds = array<i64: 64, 32>}, {pipeline_mode = #tpu.pipeline_mode<synchronous>, transform_indices = @transform_16, window_bounds = array<i64: 1, 32>}, {pipeline_mode = #tpu.pipeline_mode<synchronous>, transform_indices = @transform_17, window_bounds = array<i64: 32, 16>}, {pipeline_mode = #tpu.pipeline_mode<synchronous>, transform_indices = @transform_18, window_bounds = array<i64: 1, 16>}, {pipeline_mode = #tpu.pipeline_mode<synchronous>, transform_indices = @transform_19, window_bounds = array<i64: 1, 16>}, {pipeline_mode = #tpu.pipeline_mode<synchronous>, transform_indices = @transform_20, window_bounds = array<i64: 1, 1>}, {transform_indices = @transform_21, window_bounds = array<i64: 16, 1>}]} {
    %c0 = arith.constant 0 : index
    %c0_0 = arith.constant 0 : index
    %0 = vector.load %arg1[%c0, %c0_0] : memref<16x32xbf16, #tpu.memory_space<vmem>>, vector<16x32xbf16>
    %c0_1 = arith.constant 0 : index
    %c0_2 = arith.constant 0 : index
    %1 = vector.load %arg3[%c0_1, %c0_2] : memref<32x64xbf16, #tpu.memory_space<vmem>>, vector<32x64xbf16>
    %cst = arith.constant dense<0.000000e+00> : vector<16x64xf32>
    %2 = tpu.matmul %0, %1, %cst {dimension_numbers = #tpu.dot_dimension_numbers<[1], [0], [0], [1], [0, 0, 1, 1], [], []>} : vector<16x32xbf16>, vector<32x64xbf16>, vector<16x64xf32> -> vector<16x64xf32>
    %c0_3 = arith.constant 0 : index
    %c0_4 = arith.constant 0 : index
    %3 = vector.load %arg4[%c0_3, %c0_4] : memref<1x64xf32, #tpu.memory_space<vmem>>, vector<1x64xf32>
    %4 = vector.broadcast %3 : vector<1x64xf32> to vector<16x64xf32>
    %5 = arith.addf %2, %4 : vector<16x64xf32>
    %6 = arith.negf %5 : vector<16x64xf32>
    %7 = math.exp %6 : vector<16x64xf32>
    %cst_5 = arith.constant 1.000000e+00 : f32
    %8 = vector.broadcast %cst_5 : f32 to vector<16x64xf32>
    %9 = arith.addf %8, %7 : vector<16x64xf32>
    %10 = arith.divf %8, %9 : vector<16x64xf32>
    %11 = arith.mulf %5, %10 : vector<16x64xf32>
    %12 = arith.truncf %11 : vector<16x64xf32> to vector<16x64xbf16>
    %c0_6 = arith.constant 0 : index
    %c0_7 = arith.constant 0 : index
    %13 = vector.load %arg5[%c0_6, %c0_7] : memref<64x32xbf16, #tpu.memory_space<vmem>>, vector<64x32xbf16>
    %cst_8 = arith.constant dense<0.000000e+00> : vector<16x32xf32>
    %14 = tpu.matmul %12, %13, %cst_8 {dimension_numbers = #tpu.dot_dimension_numbers<[1], [0], [0], [1], [0, 0, 1, 1], [], []>} : vector<16x64xbf16>, vector<64x32xbf16>, vector<16x32xf32> -> vector<16x32xf32>
    %c0_9 = arith.constant 0 : index
    %c0_10 = arith.constant 0 : index
    %15 = vector.load %arg6[%c0_9, %c0_10] : memref<1x32xf32, #tpu.memory_space<vmem>>, vector<1x32xf32>
    %16 = vector.broadcast %15 : vector<1x32xf32> to vector<16x32xf32>
    %17 = arith.addf %14, %16 : vector<16x32xf32>
    %18 = arith.truncf %17 : vector<16x32xf32> to vector<16x32xbf16>
    %c0_11 = arith.constant 0 : index
    %c0_12 = arith.constant 0 : index
    %19 = vector.load %arg2[%c0_11, %c0_12] : memref<16x300xf32, #tpu.memory_space<vmem>>, vector<16x300xf32>
    %20 = arith.truncf %19 : vector<16x300xf32> to vector<16x300xbf16>
    %c0_13 = arith.constant 0 : index
    %c0_14 = arith.constant 0 : index
    %21 = vector.load %arg7[%c0_13, %c0_14] : memref<300x256xbf16, #tpu.memory_space<vmem>>, vector<300x256xbf16>
    %cst_15 = arith.constant dense<0.000000e+00> : vector<16x256xf32>
    %22 = tpu.matmul %20, %21, %cst_15 {dimension_numbers = #tpu.dot_dimension_numbers<[1], [0], [0], [1], [0, 0, 1, 1], [], []>} : vector<16x300xbf16>, vector<300x256xbf16>, vector<16x256xf32> -> vector<16x256xf32>
    %c0_16 = arith.constant 0 : index
    %c0_17 = arith.constant 0 : index
    %23 = vector.load %arg8[%c0_16, %c0_17] : memref<1x256xf32, #tpu.memory_space<vmem>>, vector<1x256xf32>
    %24 = vector.broadcast %23 : vector<1x256xf32> to vector<16x256xf32>
    %25 = arith.addf %22, %24 : vector<16x256xf32>
    %26 = arith.negf %25 : vector<16x256xf32>
    %27 = math.exp %26 : vector<16x256xf32>
    %cst_18 = arith.constant 1.000000e+00 : f32
    %28 = vector.broadcast %cst_18 : f32 to vector<16x256xf32>
    %29 = arith.addf %28, %27 : vector<16x256xf32>
    %30 = arith.divf %28, %29 : vector<16x256xf32>
    %31 = arith.mulf %25, %30 : vector<16x256xf32>
    %32 = arith.truncf %31 : vector<16x256xf32> to vector<16x256xbf16>
    %c0_19 = arith.constant 0 : index
    %c0_20 = arith.constant 0 : index
    %33 = vector.load %arg9[%c0_19, %c0_20] : memref<256x128xbf16, #tpu.memory_space<vmem>>, vector<256x128xbf16>
    %cst_21 = arith.constant dense<0.000000e+00> : vector<16x128xf32>
    %34 = tpu.matmul %32, %33, %cst_21 {dimension_numbers = #tpu.dot_dimension_numbers<[1], [0], [0], [1], [0, 0, 1, 1], [], []>} : vector<16x256xbf16>, vector<256x128xbf16>, vector<16x128xf32> -> vector<16x128xf32>
    %c0_22 = arith.constant 0 : index
    %c0_23 = arith.constant 0 : index
    %35 = vector.load %arg10[%c0_22, %c0_23] : memref<1x128xf32, #tpu.memory_space<vmem>>, vector<1x128xf32>
    %36 = vector.broadcast %35 : vector<1x128xf32> to vector<16x128xf32>
    %37 = arith.addf %34, %36 : vector<16x128xf32>
    %38 = arith.negf %37 : vector<16x128xf32>
    %39 = math.exp %38 : vector<16x128xf32>
    %cst_24 = arith.constant 1.000000e+00 : f32
    %40 = vector.broadcast %cst_24 : f32 to vector<16x128xf32>
    %41 = arith.addf %40, %39 : vector<16x128xf32>
    %42 = arith.divf %40, %41 : vector<16x128xf32>
    %43 = arith.mulf %37, %42 : vector<16x128xf32>
    %44 = arith.truncf %43 : vector<16x128xf32> to vector<16x128xbf16>
    %c0_25 = arith.constant 0 : index
    %c0_26 = arith.constant 0 : index
    %45 = vector.load %arg11[%c0_25, %c0_26] : memref<128x64xbf16, #tpu.memory_space<vmem>>, vector<128x64xbf16>
    %cst_27 = arith.constant dense<0.000000e+00> : vector<16x64xf32>
    %46 = tpu.matmul %44, %45, %cst_27 {dimension_numbers = #tpu.dot_dimension_numbers<[1], [0], [0], [1], [0, 0, 1, 1], [], []>} : vector<16x128xbf16>, vector<128x64xbf16>, vector<16x64xf32> -> vector<16x64xf32>
    %c0_28 = arith.constant 0 : index
    %c0_29 = arith.constant 0 : index
    %47 = vector.load %arg12[%c0_28, %c0_29] : memref<1x64xf32, #tpu.memory_space<vmem>>, vector<1x64xf32>
    %48 = vector.broadcast %47 : vector<1x64xf32> to vector<16x64xf32>
    %49 = arith.addf %46, %48 : vector<16x64xf32>
    %50 = arith.negf %49 : vector<16x64xf32>
    %51 = math.exp %50 : vector<16x64xf32>
    %cst_30 = arith.constant 1.000000e+00 : f32
    %52 = vector.broadcast %cst_30 : f32 to vector<16x64xf32>
    %53 = arith.addf %52, %51 : vector<16x64xf32>
    %54 = arith.divf %52, %53 : vector<16x64xf32>
    %55 = arith.mulf %49, %54 : vector<16x64xf32>
    %56 = arith.truncf %55 : vector<16x64xf32> to vector<16x64xbf16>
    %c0_31 = arith.constant 0 : index
    %c0_32 = arith.constant 0 : index
    %57 = vector.load %arg13[%c0_31, %c0_32] : memref<32x64xbf16, #tpu.memory_space<vmem>>, vector<32x64xbf16>
    %cst_33 = arith.constant dense<0.000000e+00> : vector<16x64xf32>
    %58 = tpu.matmul %18, %57, %cst_33 {dimension_numbers = #tpu.dot_dimension_numbers<[1], [0], [0], [1], [0, 0, 1, 1], [], []>} : vector<16x32xbf16>, vector<32x64xbf16>, vector<16x64xf32> -> vector<16x64xf32>
    %c0_34 = arith.constant 0 : index
    %c0_35 = arith.constant 0 : index
    %59 = vector.load %arg14[%c0_34, %c0_35] : memref<64x64xbf16, #tpu.memory_space<vmem>>, vector<64x64xbf16>
    %cst_36 = arith.constant dense<0.000000e+00> : vector<16x64xf32>
    %60 = tpu.matmul %56, %59, %cst_36 {dimension_numbers = #tpu.dot_dimension_numbers<[1], [0], [0], [1], [0, 0, 1, 1], [], []>} : vector<16x64xbf16>, vector<64x64xbf16>, vector<16x64xf32> -> vector<16x64xf32>
    %61 = arith.addf %58, %60 : vector<16x64xf32>
    %c0_37 = arith.constant 0 : index
    %c0_38 = arith.constant 0 : index
    %62 = vector.load %arg15[%c0_37, %c0_38] : memref<1x64xf32, #tpu.memory_space<vmem>>, vector<1x64xf32>
    %63 = vector.broadcast %62 : vector<1x64xf32> to vector<16x64xf32>
    %64 = arith.addf %61, %63 : vector<16x64xf32>
    %65 = arith.negf %64 : vector<16x64xf32>
    %66 = math.exp %65 : vector<16x64xf32>
    %cst_39 = arith.constant 1.000000e+00 : f32
    %67 = vector.broadcast %cst_39 : f32 to vector<16x64xf32>
    %68 = arith.addf %67, %66 : vector<16x64xf32>
    %69 = arith.divf %67, %68 : vector<16x64xf32>
    %70 = arith.mulf %64, %69 : vector<16x64xf32>
    %71 = arith.truncf %70 : vector<16x64xf32> to vector<16x64xbf16>
    %c0_40 = arith.constant 0 : index
    %c0_41 = arith.constant 0 : index
    %72 = vector.load %arg16[%c0_40, %c0_41] : memref<64x32xbf16, #tpu.memory_space<vmem>>, vector<64x32xbf16>
    %cst_42 = arith.constant dense<0.000000e+00> : vector<16x32xf32>
    %73 = tpu.matmul %71, %72, %cst_42 {dimension_numbers = #tpu.dot_dimension_numbers<[1], [0], [0], [1], [0, 0, 1, 1], [], []>} : vector<16x64xbf16>, vector<64x32xbf16>, vector<16x32xf32> -> vector<16x32xf32>
    %c0_43 = arith.constant 0 : index
    %c0_44 = arith.constant 0 : index
    %74 = vector.load %arg17[%c0_43, %c0_44] : memref<1x32xf32, #tpu.memory_space<vmem>>, vector<1x32xf32>
    %75 = vector.broadcast %74 : vector<1x32xf32> to vector<16x32xf32>
    %76 = arith.addf %73, %75 : vector<16x32xf32>
    %77 = arith.negf %76 : vector<16x32xf32>
    %78 = math.exp %77 : vector<16x32xf32>
    %cst_45 = arith.constant 1.000000e+00 : f32
    %79 = vector.broadcast %cst_45 : f32 to vector<16x32xf32>
    %80 = arith.addf %79, %78 : vector<16x32xf32>
    %81 = arith.divf %79, %80 : vector<16x32xf32>
    %82 = arith.mulf %76, %81 : vector<16x32xf32>
    %83 = arith.truncf %82 : vector<16x32xf32> to vector<16x32xbf16>
    %c0_46 = arith.constant 0 : index
    %c0_47 = arith.constant 0 : index
    %84 = vector.load %arg18[%c0_46, %c0_47] : memref<32x16xbf16, #tpu.memory_space<vmem>>, vector<32x16xbf16>
    %cst_48 = arith.constant dense<0.000000e+00> : vector<16x16xf32>
    %85 = tpu.matmul %83, %84, %cst_48 {dimension_numbers = #tpu.dot_dimension_numbers<[1], [0], [0], [1], [0, 0, 1, 1], [], []>} : vector<16x32xbf16>, vector<32x16xbf16>, vector<16x16xf32> -> vector<16x16xf32>
    %c0_49 = arith.constant 0 : index
    %c0_50 = arith.constant 0 : index
    %86 = vector.load %arg19[%c0_49, %c0_50] : memref<1x16xf32, #tpu.memory_space<vmem>>, vector<1x16xf32>
    %87 = vector.broadcast %86 : vector<1x16xf32> to vector<16x16xf32>
    %88 = arith.addf %85, %87 : vector<16x16xf32>
    %89 = arith.negf %88 : vector<16x16xf32>
    %90 = math.exp %89 : vector<16x16xf32>
    %cst_51 = arith.constant 1.000000e+00 : f32
    %91 = vector.broadcast %cst_51 : f32 to vector<16x16xf32>
    %92 = arith.addf %91, %90 : vector<16x16xf32>
    %93 = arith.divf %91, %92 : vector<16x16xf32>
    %94 = arith.mulf %88, %93 : vector<16x16xf32>
    %95 = arith.truncf %94 : vector<16x16xf32> to vector<16x16xbf16>
    %c0_52 = arith.constant 0 : index
    %c0_53 = arith.constant 0 : index
    %96 = vector.load %arg20[%c0_52, %c0_53] : memref<1x16xf32, #tpu.memory_space<vmem>>, vector<1x16xf32>
    %97 = arith.extf %95 : vector<16x16xbf16> to vector<16x16xf32>
    %98 = vector.broadcast %96 : vector<1x16xf32> to vector<16x16xf32>
    %99 = arith.mulf %97, %98 : vector<16x16xf32>
    %cst_54 = arith.constant dense<0.000000e+00> : vector<16xf32>
    %100 = vector.multi_reduction <add>, %99, %cst_54 [1] : vector<16x16xf32> to vector<16xf32>
    %101 = vector.shape_cast %100 : vector<16xf32> to vector<16x1xf32>
    %c0_55 = arith.constant 0 : index
    %c0_56 = arith.constant 0 : index
    %102 = vector.load %arg21[%c0_55, %c0_56] : memref<1x1xf32, #tpu.memory_space<vmem>>, vector<1x1xf32>
    %103 = vector.broadcast %102 : vector<1x1xf32> to vector<16x1xf32>
    %104 = arith.addf %101, %103 : vector<16x1xf32>
    %c0_57 = arith.constant 0 : index
    %c0_58 = arith.constant 0 : index
    %105 = vector.load %arg22[%c0_57, %c0_58] : memref<16x1xf32, #tpu.memory_space<vmem>>, vector<16x1xf32>
    tpu.vector_store %arg22[%c0_57, %c0_58], %104 {strides = array<i32>} : memref<16x1xf32, #tpu.memory_space<vmem>>, vector<16x1xf32>,
    return
  }
  func.func @transform_0(%arg0: i32) -> (i32, i32) {
    %c0_i32 = arith.constant 0 : i32
    %c0_i32_0 = arith.constant 0 : i32
    return %arg0, %c0_i32 : i32, i32
  }
  func.func @transform_1(%arg0: i32) -> (i32, i32) {
    %c0_i32 = arith.constant 0 : i32
    %c0_i32_0 = arith.constant 0 : i32
    return %arg0, %c0_i32 : i32, i32
  }
  func.func @transform_2(%arg0: i32) -> (i32, i32) {
    %c0_i32 = arith.constant 0 : i32
    %c0_i32_0 = arith.constant 0 : i32
    %c0_i32_1 = arith.constant 0 : i32
    return %c0_i32, %c0_i32_0 : i32, i32
  }
  func.func @transform_3(%arg0: i32) -> (i32, i32) {
    %c0_i32 = arith.constant 0 : i32
    %c0_i32_0 = arith.constant 0 : i32
    %c0_i32_1 = arith.constant 0 : i32
    return %c0_i32, %c0_i32_0 : i32, i32
  }
  func.func @transform_4(%arg0: i32) -> (i32, i32) {
    %c0_i32 = arith.constant 0 : i32
    %c0_i32_0 = arith.constant 0 : i32
    %c0_i32_1 = arith.constant 0 : i32
    return %c0_i32, %c0_i32_0 : i32, i32
  }
  func.func @transform_5(%arg0: i32) -> (i32, i32) {
    %c0_i32 = arith.constant 0 : i32
    %c0_i32_0 = arith.constant 0 : i32
    %c0_i32_1 = arith.constant 0 : i32
    return %c0_i32, %c0_i32_0 : i32, i32
  }
  func.func @transform_6(%arg0: i32) -> (i32, i32) {
    %c0_i32 = arith.constant 0 : i32
    %c0_i32_0 = arith.constant 0 : i32
    %c0_i32_1 = arith.constant 0 : i32
    return %c0_i32, %c0_i32_0 : i32, i32
  }
  func.func @transform_7(%arg0: i32) -> (i32, i32) {
    %c0_i32 = arith.constant 0 : i32
    %c0_i32_0 = arith.constant 0 : i32
    %c0_i32_1 = arith.constant 0 : i32
    return %c0_i32, %c0_i32_0 : i32, i32
  }
  func.func @transform_8(%arg0: i32) -> (i32, i32) {
    %c0_i32 = arith.constant 0 : i32
    %c0_i32_0 = arith.constant 0 : i32
    %c0_i32_1 = arith.constant 0 : i32
    return %c0_i32, %c0_i32_0 : i32, i32
  }
  func.func @transform_9(%arg0: i32) -> (i32, i32) {
    %c0_i32 = arith.constant 0 : i32
    %c0_i32_0 = arith.constant 0 : i32
    %c0_i32_1 = arith.constant 0 : i32
    return %c0_i32, %c0_i32_0 : i32, i32
  }
  func.func @transform_10(%arg0: i32) -> (i32, i32) {
    %c0_i32 = arith.constant 0 : i32
    %c0_i32_0 = arith.constant 0 : i32
    %c0_i32_1 = arith.constant 0 : i32
    return %c0_i32, %c0_i32_0 : i32, i32
  }
  func.func @transform_11(%arg0: i32) -> (i32, i32) {
    %c0_i32 = arith.constant 0 : i32
    %c0_i32_0 = arith.constant 0 : i32
    %c0_i32_1 = arith.constant 0 : i32
    return %c0_i32, %c0_i32_0 : i32, i32
  }
  func.func @transform_12(%arg0: i32) -> (i32, i32) {
    %c0_i32 = arith.constant 0 : i32
    %c0_i32_0 = arith.constant 0 : i32
    %c0_i32_1 = arith.constant 0 : i32
    return %c0_i32, %c0_i32_0 : i32, i32
  }
  func.func @transform_13(%arg0: i32) -> (i32, i32) {
    %c0_i32 = arith.constant 0 : i32
    %c0_i32_0 = arith.constant 0 : i32
    %c0_i32_1 = arith.constant 0 : i32
    return %c0_i32, %c0_i32_0 : i32, i32
  }
  func.func @transform_14(%arg0: i32) -> (i32, i32) {
    %c0_i32 = arith.constant 0 : i32
    %c0_i32_0 = arith.constant 0 : i32
    %c0_i32_1 = arith.constant 0 : i32
    return %c0_i32, %c0_i32_0 : i32, i32
  }
  func.func @transform_15(%arg0: i32) -> (i32, i32) {
    %c0_i32 = arith.constant 0 : i32
    %c0_i32_0 = arith.constant 0 : i32
    %c0_i32_1 = arith.constant 0 : i32
    return %c0_i32, %c0_i32_0 : i32, i32
  }
  func.func @transform_16(%arg0: i32) -> (i32, i32) {
    %c0_i32 = arith.constant 0 : i32
    %c0_i32_0 = arith.constant 0 : i32
    %c0_i32_1 = arith.constant 0 : i32
    return %c0_i32, %c0_i32_0 : i32, i32
  }
  func.func @transform_17(%arg0: i32) -> (i32, i32) {
    %c0_i32 = arith.constant 0 : i32
    %c0_i32_0 = arith.constant 0 : i32
    %c0_i32_1 = arith.constant 0 : i32
    return %c0_i32, %c0_i32_0 : i32, i32
  }
  func.func @transform_18(%arg0: i32) -> (i32, i32) {
    %c0_i32 = arith.constant 0 : i32
    %c0_i32_0 = arith.constant 0 : i32
    %c0_i32_1 = arith.constant 0 : i32
    return %c0_i32, %c0_i32_0 : i32, i32
  }
  func.func @transform_19(%arg0: i32) -> (i32, i32) {
    %c0_i32 = arith.constant 0 : i32
    %c0_i32_0 = arith.constant 0 : i32
    %c0_i32_1 = arith.constant 0 : i32
    return %c0_i32, %c0_i32_0 : i32, i32
  }
  func.func @transform_20(%arg0: i32) -> (i32, i32) {
    %c0_i32 = arith.constant 0 : i32
    %c0_i32_0 = arith.constant 0 : i32
    %c0_i32_1 = arith.constant 0 : i32
    return %c0_i32, %c0_i32_0 : i32, i32
  }
  func.func @transform_21(%arg0: i32) -> (i32, i32) {
    %c0_i32 = arith.constant 0 : i32
    %c0_i32_0 = arith.constant 0 : i32
    return %arg0, %c0_i32 : i32, i32
  }
}

</mosaic_0001>

<bundles_post_ra>
// kernel: catmodel_forward.1
= control target key start
LH: loop header
LB: loop body
LE: loop exit
PB: predicated region body
PF: predicated region fallthrough
CT: control target
= control target key end

     0   :  { %v1728_v0 = vmov 0.0   ;;  %vm1729_vm0 = vmmov 0   ;;  %vm101_vm1 = vcmask 261120   ;;  %vm497_vm2 = vcmask 1045504   ;;  %s2195_s2 = inlined_call_operand.vmem [shape: bf16[32,64], index: 2, kind: input, shape index: {}]   ;;  %s2196_s0 = inlined_call_operand.vmem [shape: bf16[16,32], index: 0, kind: input, shape index: {}]   ;;  %s2197_s6 = inlined_call_operand.vmem [shape: bf16[300,256], index: 6, kind: input, shape index: {}]   ;;  %s2198_s4 = inlined_call_operand.vmem [shape: bf16[64,32], index: 4, kind: input, shape index: {}]   ;;  %s2199_s1 = inlined_call_operand.vmem [shape: f32[16,300], index: 1, kind: input, shape index: {}]   ;;  %s2200_s3 = inlined_call_operand.vmem [shape: f32[1,64], index: 3, kind: input, shape index: {}]   ;;  %s2201_s8 = inlined_call_operand.vmem [shape: bf16[256,128], index: 8, kind: input, shape index: {}]   ;;  %s2202_s5 = inlined_call_operand.vmem [shape: f32[1,32], index: 5, kind: input, shape index: {}]   ;;  %s2203_s7 = inlined_call_operand.vmem [shape: f32[1,256], index: 7, kind: input, shape index: {}]   ;;  %s2204_s10 = inlined_call_operand.vmem [shape: bf16[128,64], index: 10, kind: input, shape index: {}]   ;;  %s2205_s9 = inlined_call_operand.vmem [shape: f32[1,128], index: 9, kind: input, shape index: {}]   ;;  %s2206_s13 = inlined_call_operand.vmem [shape: bf16[64,64], index: 13, kind: input, shape index: {}]   ;;  %s2207_s12 = inlined_call_operand.vmem [shape: bf16[32,64], index: 12, kind: input, shape index: {}]   ;;  %s2208_s11 = inlined_call_operand.vmem [shape: f32[1,64], index: 11, kind: input, shape index: {}]   ;;  %s2209_s15 = inlined_call_operand.vmem [shape: bf16[64,32], index: 15, kind: input, shape index: {}]   ;;  %s2210_s14 = inlined_call_operand.vmem [shape: f32[1,64], index: 14, kind: input, shape index: {}]   ;;  %s2211_s17 = inlined_call_operand.vmem [shape: bf16[32,16], index: 17, kind: input, shape index: {}]   ;;  %s2212_s16 = inlined_call_operand.vmem [shape: f32[1,32], index: 16, kind: input, shape index: {}]   ;;  %s2213_s20 = inlined_call_operand.<no memory space> [shape: f32[1,1], index: 20, kind: input, shape index: {}]   ;;  %s2214_s18 = inlined_call_operand.vmem [shape: f32[1,16], index: 18, kind: input, shape index: {}]   ;;  %s2215_s19 = inlined_call_operand.vmem [shape: f32[1,16], index: 19, kind: input, shape index: {}]   ;;  %s2216_s21 = inlined_call_operand.vmem [shape: f32[16,1], index: 21, kind: output, shape index: {}]  }
   0x1   :  { %2221 = sst [smem:[#allocation3_spill]] %s2195_s2  ;;  %1481 = vmatprep.subr.bf16.mxu0 %v1728_v0  ;;  %1485 = vmatprep.mubr.msk.bf16.mxu0 %vm1729_vm0, %v1728_v0  ;;  %vm200_vm3 = vcmask 523264   ;;  %vm493_vm4 = vcmask 359424   ;;  %vm1289_vm5 = vcmask 130048   ;;  %vm1305_vm6 = vcmask 7168  }
   0x2   :  { %2222 = sst [smem:[#allocation4_spill]] %s2196_s0  ;;  %1489 = vmatprep.subr.bf16.mxu1 %v1728_v0  ;;  %1497 = vmatprep.mubr.msk.bf16.mxu1 %vm1729_vm0, %v1728_v0 }
   0x3   :  { %2223 = sst [smem:[#allocation5_spill]] %s2197_s6 }
   0x4   :  { %2224 = sst [smem:[#allocation6_spill]] %s2198_s4 }
   0x5   :  { %2225 = sst [smem:[#allocation7_spill]] %s2199_s1 }
   0x6   :  { %2226 = sst [smem:[#allocation8_spill]] %s2200_s3 }
   0x7   :  { %s2227_s26 = sld [smem:[#allocation3_spill]] }
   0x8   :  { %s2228_s29 = sld [smem:[#allocation5_spill]] }
   0x9   :  { %s2229_s3 = sld [smem:[#allocation4_spill]] }
   0xa   :  { %s2231_s25 = sld [smem:[#allocation7_spill]] }
   0xb   :  { %s2232_s23 = sld [smem:[#allocation8_spill]] }
   0xd   :  { %v1564_v1 = vld [vmem:[%s2227_s26 + $0x8] sm:$0xff]   ;;  %v1565_v2 = vld [vmem:[%s2227_s26] sm:$0xff]   ;;  %s2230_s26 = sld [smem:[#allocation6_spill]] }
   0xe   :  { %1482 = vmatpush3.bf16.msra.mxu0 %v1564_v1  ;;  %v1569_v3 = vld [vmem:[%s2228_s29 + $0x74] ss:$8 sps:$4 sm:$0xff]   ;;  %v1567_v5 = vld [vmem:[%s2228_s29 + $0x70] ss:$8 sps:$4 sm:$0xff]   ;;  %v1572_v6 = vld [vmem:[%s2228_s29 + $0x64] ss:$8 sps:$4 sm:$0xff]  }
   0xf   :  { %1483 = vmatprep.subr.bf16.mxu0 %v1728_v0  ;;  %v1566_v4 = vld [vmem:[%s2229_s3] sm:$0xff]   ;;  %v1575_v8 = vld [vmem:[%s2228_s29 + $0x54] ss:$8 sps:$4 sm:$0xff]   ;;  %v1573_v9 = vld [vmem:[%s2228_s29 + $0x50] ss:$8 sps:$4 sm:$0xff]  }
  0x10   :  { %v1570_v7 = vld [vmem:[%s2228_s29 + $0x60] ss:$8 sps:$4 sm:$0xff]   ;;  %v1578_v10 = vld [vmem:[%s2228_s29 + $0x44] ss:$8 sps:$4 sm:$0xff]   ;;  %v1581_v12 = vld [vmem:[%s2228_s29 + $0x34] ss:$8 sps:$4 sm:$0xff]  }
  0x11   :  { %v1576_v11 = vld [vmem:[%s2228_s29 + $0x40] ss:$8 sps:$4 sm:$0xff]   ;;  %v1579_v13 = vld [vmem:[%s2228_s29 + $0x30] ss:$8 sps:$4 sm:$0xff]   ;;  %v1584_v14 = vld [vmem:[%s2228_s29 + $0x24] ss:$8 sps:$4 sm:$0xff]  }
  0x12   :  { %1484 = vmatpush3.bf16.msra.mxu0 %v1565_v2  ;;  %v1582_v15 = vld [vmem:[%s2228_s29 + $0x20] ss:$8 sps:$4 sm:$0xff]   ;;  %v1587_v16 = vld [vmem:[%s2228_s29 + $0x14] ss:$8 sps:$4 sm:$0xff]   ;;  %v1585_v17 = vld [vmem:[%s2228_s29 + $0x10] ss:$8 sps:$4 sm:$0xff]  }
  0x13   :  { %504 = vmatprep.subr.bf16.mxu0 %v1569_v3  ;;  %v1590_v18 = vld [vmem:[%s2228_s29 + $0x4] ss:$8 sps:$4 sm:$0xff]   ;;  %v1588_v19 = vld [vmem:[%s2228_s29] ss:$8 sps:$4 sm:$0xff]   ;;  %v1593_v20 = vld [vmem:[%s2228_s29 + $0xf4] ss:$8 sps:$4 sm:$0xff]  }
  0x14   :  { %v1591_v21 = vld [vmem:[%s2228_s29 + $0xf0] ss:$8 sps:$4 sm:$0xff]   ;;  %v1596_v22 = vld [vmem:[%s2228_s29 + $0xe4] ss:$8 sps:$4 sm:$0xff]   ;;  %v1594_v23 = vld [vmem:[%s2228_s29 + $0xe0] ss:$8 sps:$4 sm:$0xff]  }
  0x15   :  { %1486 = vmatmul.mubr.msk.bf16.vlgmr.msra.gmra.mxu0 %vm101_vm1, %v1566_v4  ;;  %v1599_v24 = vld [vmem:[%s2228_s29 + $0xd4] ss:$8 sps:$4 sm:$0xff]   ;;  %v1597_v25 = vld [vmem:[%s2228_s29 + $0xd0] ss:$8 sps:$4 sm:$0xff]   ;;  %v1602_v26 = vld [vmem:[%s2228_s29 + $0xc4] ss:$8 sps:$4 sm:$0xff]  }
  0x16   :  { %505 = vmatpush1.bf16.msra.mxu0 %v1567_v5  ;;  %v1600_v27 = vld [vmem:[%s2228_s29 + $0xc0] ss:$8 sps:$4 sm:$0xff]   ;;  %v1603_v28 = vld [vmem:[%s2230_s26 + $0x18] sm:$0xff]   ;;  %v1607_v31 = vld [vmem:[%s2230_s26 + $0x10] sm:$0xff]  }
  0x17   :  { %506 = vmatprep.subr.bf16.mxu0 %v1572_v6  ;;  %1490 = vmatpush3.bf16.msra.mxu1 %v1603_v28  ;;  %v1606_v29 = vld [vmem:[%s2228_s29 + $0xb4] ss:$8 sps:$4 sm:$0xff]   ;;  %v1604_v30 = vld [vmem:[%s2228_s29 + $0xb0] ss:$8 sps:$4 sm:$0xff]   ;;  %v1610_v32 = vld [vmem:[%s2228_s29 + $0xa4] ss:$8 sps:$4 sm:$0xff]   ;;  %v295_v28 = vlaneseq }
  0x18   :  { %1491 = vmatprep.subr.bf16.mxu1 %v1728_v0  ;;  %v1608_v33 = vld [vmem:[%s2228_s29 + $0xa0] ss:$8 sps:$4 sm:$0xff]   ;;  %v1614_v35 = vld [vmem:[%s2228_s29 + $0x94] ss:$8 sps:$4 sm:$0xff]   ;;  %v1612_v36 = vld [vmem:[%s2228_s29 + $0x90] ss:$8 sps:$4 sm:$0xff]  }
  0x19   :  { %v1611_v34 = vld [vmem:[%s2230_s26 + $0x8] sm:$0xff]   ;;  %v1615_v37 = vld [vmem:[%s2230_s26] sm:$0xff]   ;;  %v249_v45 = vld [vmem:[%s2231_s25 + $0x18] sm:$0xff]  ;;  %v1730_v6 = vmov 0  }
  0x1a   :  { %507 = vmatpush1.bf16.msra.mxu0 %v1570_v7  ;;  %v1618_v38 = vld [vmem:[%s2228_s29 + $0x84] ss:$8 sps:$4 sm:$0xff]   ;;  %v1616_v40 = vld [vmem:[%s2228_s29 + $0x80] ss:$8 sps:$4 sm:$0xff]   ;;  %v1624_v4 = vld [vmem:[%s2228_s29 + $0x114] ss:$8 sps:$4 sm:$0xff]  }
  0x1b   :  { %508 = vmatprep.subr.bf16.mxu0 %v1575_v8  ;;  %1492 = vmatpush3.bf16.msra.mxu1 %v1607_v31  ;;  %v1619_v39 = vld [vmem:[%s2228_s29 + $0x124] ss:$8 sps:$4 sm:$0x3f]   ;;  %v1312_v47 = vld [vmem:[%s2232_s23] ss:$0 sm:$0xff] }
  0x1c   :  { %1493 = vmatprep.subr.bf16.mxu1 %v1728_v0  ;;  %v247_v41 = vld [vmem:[%s2231_s25 + $0x8] sm:$0xff]  ;;  %v250_v42 = vld [vmem:[%s2231_s25 + $0x20] sm:$0xff]  ;;  %v1622_v5 = vld [vmem:[%s2228_s29 + $0x110] ss:$8 sps:$4 sm:$0xff]  }
  0x1d   :  { %v253_v43 = vpack.c.bf16 %v250_v42, %v247_v41  ;;  %v246_v44 = vld [vmem:[%s2231_s25] sm:$0xff] }
  0x1e   :  { %509 = vmatpush1.bf16.msra.mxu0 %v1573_v9  ;;  %v252_v46 = vpack.c.bf16 %v249_v45, %v246_v44  ;;  %v1621_v61 = vld [vmem:[%s2228_s29 + $0x120] ss:$8 sps:$4 sm:$0x3f]   ;;  %v1627_v7 = vld [vmem:[%s2228_s29 + $0x104] ss:$8 sps:$4 sm:$0xff]   ;;  %v248_v9 = vld [vmem:[%s2231_s25 + $0x10] sm:$0xff] }
  0x1f   :  { %510 = vmatprep.subr.bf16.mxu0 %v1578_v10  ;;  %1494 = vmatpush3.bf16.msra.mxu1 %v1611_v34  ;;  %v499_v3 = vsel %vm497_vm2, %v1621_v61, 0  ;;  %v1625_v8 = vld [vmem:[%s2228_s29 + $0x100] ss:$8 sps:$4 sm:$0xff]  }
  0x20   :  { %1495 = vmatprep.subr.bf16.mxu1 %v1728_v0  ;;  %536 = vmatprep.mubr.bf16.mxu0 %v253_v43  ;;  %v251_v10 = vld [vmem:[%s2231_s25 + $0x28] sm:$0xff]  ;;  %v293_v34 = vld [vmem:[%s2203_s7] sm:$0x3] }
  0x22   :  { %511 = vmatpush1.bf16.msra.mxu0 %v1576_v11  ;;  %v254_v11 = vpack.c.bf16 %v251_v10, %v248_v9 }
  0x23   :  { %512 = vmatprep.subr.bf16.mxu0 %v1581_v12  ;;  %1496 = vmatpush3.bf16.msra.mxu1 %v1615_v37  ;;  %v1628_v12 = vld [vmem:[%s2201_s8 + $0x78] sm:$0xff]  }
  0x24   :  { %1363 = vmatprep.subr.msk.bf16.mxu1 %vm497_vm2, %v1619_v39 }
  0x26   :  { %513 = vmatpush1.bf16.msra.mxu0 %v1579_v13  ;;  %v1629_v13 = vld [vmem:[%s2201_s8 + $0x38] sm:$0xff]  }
  0x27   :  { %514 = vmatprep.subr.bf16.mxu0 %v1584_v14  ;;  %v1630_v14 = vld [vmem:[%s2201_s8 + $0x70] sm:$0xff]  }
  0x2a   :  { %515 = vmatpush1.bf16.msra.mxu0 %v1582_v15  ;;  %v1631_v15 = vld [vmem:[%s2201_s8 + $0x30] sm:$0xff]  }
  0x2b   :  { %516 = vmatprep.subr.bf16.mxu0 %v1587_v16  ;;  %v1632_v16 = vld [vmem:[%s2201_s8 + $0x68] sm:$0xff]  }
  0x2e   :  { %517 = vmatpush1.bf16.msra.mxu0 %v1585_v17  ;;  %v1633_v17 = vld [vmem:[%s2201_s8 + $0x28] sm:$0xff]  }
  0x2f   :  { %518 = vmatprep.subr.bf16.mxu0 %v1590_v18  ;;  %v1634_v18 = vld [vmem:[%s2201_s8 + $0x60] sm:$0xff]  }
  0x32   :  { %519 = vmatpush1.bf16.msra.mxu0 %v1588_v19  ;;  %v1635_v19 = vld [vmem:[%s2201_s8 + $0x20] sm:$0xff]  }
  0x33   :  { %520 = vmatprep.subr.bf16.mxu0 %v1593_v20  ;;  %v1636_v20 = vld [vmem:[%s2201_s8 + $0x58] sm:$0xff]  }
  0x36   :  { %521 = vmatpush2.bf16.msra.mxu0 %v1591_v21  ;;  %v1637_v21 = vld [vmem:[%s2201_s8 + $0x18] sm:$0xff]  }
  0x37   :  { %522 = vmatprep.subr.bf16.mxu0 %v1596_v22  ;;  %v1638_v22 = vld [vmem:[%s2201_s8 + $0x50] sm:$0xff]  }
  0x3a   :  { %523 = vmatpush2.bf16.msra.mxu0 %v1594_v23  ;;  %v1639_v23 = vld [vmem:[%s2201_s8 + $0x10] sm:$0xff]  }
  0x3b   :  { %524 = vmatprep.subr.bf16.mxu0 %v1599_v24  ;;  %v1640_v24 = vld [vmem:[%s2201_s8 + $0x48] sm:$0xff]  }
  0x3e   :  { %525 = vmatpush2.bf16.msra.mxu0 %v1597_v25  ;;  %v1641_v25 = vld [vmem:[%s2201_s8 + $0x8] sm:$0xff]  }
  0x3f   :  { %526 = vmatprep.subr.bf16.mxu0 %v1602_v26  ;;  %v1642_v26 = vld [vmem:[%s2201_s8 + $0x40] sm:$0xff]  }
  0x42   :  { %527 = vmatpush2.bf16.msra.mxu0 %v1600_v27  ;;  %v1643_v27 = vld [vmem:[%s2201_s8] sm:$0xff]  }
  0x43   :  { %528 = vmatprep.subr.bf16.mxu0 %v1606_v29  ;;  %v296_v29 = vshrl.u32 %v295_v28, 7 }
  0x45   :  { %v297_v31 = vsub.s32 0, %v296_v29 }
  0x46   :  { %529 = vmatpush2.bf16.msra.mxu0 %v1604_v30 }
  0x47   :  { %530 = vmatprep.subr.bf16.mxu0 %v1610_v32  ;;  %v1319_v32 = vld [vmem:[%s2202_s5] ss:$0 sm:$0xff] }
  0x4a   :  { %531 = vmatpush2.bf16.msra.mxu0 %v1608_v33 }
  0x4b   :  { %532 = vmatprep.subr.bf16.mxu0 %v1614_v35 }
  0x4e   :  { %533 = vmatpush2.bf16.msra.mxu0 %v1612_v36 }
  0x4f   :  { %534 = vmatprep.subr.bf16.mxu0 %v1618_v38  ;;  %v298_v38 = vrot.slane %v293_v34, %v297_v31 }
  0x52   :  { %535 = vmatpush2.bf16.msra.mxu0 %v1616_v40  ;;  %v301_v40 = vsub.s32 1, %v296_v29 }
  0x53   :  { %1521 = vmatprep.subr.bf16.mxu0 %v1728_v0 }
  0x54   :  { %v302_v45 = vrot.slane %v293_v34, %v301_v40 }
  0x55   :  { %537 = vmatmul.mubr.bf16.vlgmr.msra.gmra.mxu0 %v252_v46 }
  0x56   :  { %1529 = vmatprep.mubr.msk.bf16.mxu0 %vm1729_vm0, %v1728_v0 }
  0xd5   :  { %v139_v48 = vpop.f32.mrf.mxu0 }
  0xd6   :  { %v140_v49 = vadd.f32 %v1312_v47, %v139_v48 }
  0xd7   :  { %v1487_v50 = vpop.f32.mrf.mxu0 }
  0xd8   :  { %v1317_v51 = vmul.f32 -1.442695, %v140_v49 }
  0xd9   :  { %v142_v52 = vpop.f32.mrf.mxu0 }
  0xda   :  { %1664 = vpow2.f32 %v1317_v51  ;;  %v143_v53 = vadd.f32 %v1312_v47, %v142_v52 }
  0xdb   :  { %v1488_v54 = vpop.f32.mrf.mxu0 }
  0xdc   :  { %v1318_v55 = vmul.f32 -1.442695, %v143_v53 }
  0xde   :  { %1666 = vpow2.f32 %v1318_v55 }
  0xe7   :  { %v1665_v56 = vpop.eup %1664 }
  0xe8   :  { %v152_v57 = vadd.f32 1.0, %v1665_v56 }
  0xea   :  { %1668 = vrcp.f32 %v152_v57 }
  0xeb   :  { %v1667_v58 = vpop.eup %1666 }
  0xec   :  { %v153_v59 = vadd.f32 1.0, %v1667_v58 }
  0xee   :  { %1670 = vrcp.f32 %v153_v59 }
  0xf7   :  { %v1669_v60 = vpop.eup %1668 }
  0xf8   :  { %v158_v63 = vmul.f32 %v1669_v60, %v140_v49 }
  0xfb   :  { %v1671_v62 = vpop.eup %1670 }
  0xfc   :  { %v159_v1 = vmul.f32 %v1671_v62, %v143_v53 }
  0xfe   :  { %v160_v2 = vpack.c.bf16 %v159_v1, %v158_v63 }
 0x100   :  { %1498 = vmatmul.mubr.msk.bf16.vlgmr.msra.gmra.mxu1 %vm200_vm3, %v160_v2 }
 0x101   :  { %558 = vmatpush1.bf16.msra.mxu1 %v499_v3  ;;  %579 = vmatprep.mubr.bf16.mxu1 %v1730_v6 }
 0x102   :  { %559 = vmatprep.subr.bf16.mxu1 %v1624_v4 }
 0x105   :  { %560 = vmatpush1.bf16.msra.mxu1 %v1622_v5 }
 0x106   :  { %561 = vmatprep.subr.bf16.mxu1 %v1627_v7 }
 0x109   :  { %562 = vmatpush1.bf16.msra.mxu1 %v1625_v8 }
 0x10a   :  { %1434 = vmatprep.subr.bf16.mxu1 %v1628_v12 }
 0x10c   :  { %1364 = vmatmul.mubr.msk.bf16.vlgmr.msra.gmra.mxu1 %vm493_vm4, %v254_v11 }
 0x10d   :  { %1435 = vmatpush3.bf16.msra.mxu1 %v1629_v13 }
 0x10e   :  { %1436 = vmatprep.subr.bf16.mxu1 %v1630_v14 }
 0x111   :  { %1437 = vmatpush3.bf16.msra.mxu1 %v1631_v15 }
 0x112   :  { %1438 = vmatprep.subr.bf16.mxu1 %v1632_v16 }
 0x115   :  { %1439 = vmatpush3.bf16.msra.mxu1 %v1633_v17  ;;  %v538_v35 = vpop.f32.mrf.mxu0 }
 0x116   :  { %1440 = vmatprep.subr.bf16.mxu1 %v1634_v18  ;;  %v539_v44 = vadd.f32 %v538_v35, %v298_v38  ;;  %v1644_v18 = vld [vmem:[%s2204_s10 + $0x38] sm:$0xff]  }
 0x117   :  { %v540_v41 = vpop.f32.mrf.mxu0 }
 0x118   :  { %v541_v48 = vadd.f32 %v540_v41, %v302_v45 }
 0x119   :  { %1441 = vmatpush3.bf16.msra.mxu1 %v1635_v19  ;;  %v542_v46 = vpop.f32.mrf.mxu0  ;;  %v1645_v19 = vld [vmem:[%s2204_s10 + $0x30] sm:$0xff]  }
 0x11a   :  { %1442 = vmatprep.subr.bf16.mxu1 %v1636_v20  ;;  %v543_v52 = vadd.f32 %v542_v46, %v298_v38  ;;  %v1646_v20 = vld [vmem:[%s2204_s10 + $0x28] sm:$0xff]  }
 0x11b   :  { %v544_v50 = vpop.f32.mrf.mxu0 }
 0x11c   :  { %v545_v56 = vadd.f32 %v544_v50, %v302_v45  ;;  %v1653_v50 = vld [vmem:[%s2206_s13 + $0x10] sm:$0xff]  }
 0x11d   :  { %1443 = vmatpush3.bf16.msra.mxu1 %v1637_v21  ;;  %v1647_v21 = vld [vmem:[%s2204_s10 + $0x20] sm:$0xff]  }
 0x11e   :  { %1444 = vmatprep.subr.bf16.mxu1 %v1638_v22  ;;  %v1648_v22 = vld [vmem:[%s2204_s10 + $0x18] sm:$0xff]  }
 0x121   :  { %1445 = vmatpush3.bf16.msra.mxu1 %v1639_v23  ;;  %v1649_v23 = vld [vmem:[%s2204_s10 + $0x10] sm:$0xff]  }
 0x122   :  { %1446 = vmatprep.subr.bf16.mxu1 %v1640_v24  ;;  %v1650_v24 = vld [vmem:[%s2204_s10 + $0x8] sm:$0xff]  }
 0x125   :  { %1447 = vmatpush3.bf16.msra.mxu1 %v1641_v25  ;;  %v1651_v25 = vld [vmem:[%s2204_s10] sm:$0xff]  }
 0x126   :  { %1448 = vmatprep.subr.bf16.mxu1 %v1642_v26 }
 0x129   :  { %1449 = vmatpush3.bf16.msra.mxu1 %v1643_v27  ;;  %v1369_v27 = vld [vmem:[%s2205_s9] ss:$0 sm:$0xff] }
 0x12a   :  { %1501 = vmatprep.subr.bf16.mxu1 %v1728_v0 }
 0x1c0   :  { %v238_v30 = vpop.f32.mrf.mxu1 }
 0x1c1   :  { %v2069_v37 = vadd.f32 %v1319_v32, %v238_v30 }
 0x1c2   :  { %v1499_v33 = vpop.f32.mrf.mxu1 }
 0x1c4   :  { %v241_v36 = vpop.f32.mrf.mxu1 }
 0x1c5   :  { %v2071_v39 = vadd.f32 %v1319_v32, %v241_v36 }
 0x1c6   :  { %v1500_v42 = vpop.f32.mrf.mxu1 }
 0x1c7   :  { %v245_v43 = vpack.c.bf16 %v2071_v39, %v2069_v37  ;;  %v1660_v37 = vld [vmem:[%s2209_s15 + $0x8] sm:$0xff]   ;;  %v1661_v39 = vld [vmem:[%s2209_s15] sm:$0xff]  }
 0x1cc   :  { %v581_v47 = vpop.f32.mrf.mxu1 }
 0x1cd   :  { %v582_v49 = vadd.f32 %v581_v47, %v539_v44 }
 0x1ce   :  { %v583_v51 = vpop.f32.mrf.mxu1 }
 0x1cf   :  { %v1365_v53 = vmul.f32 -1.442695, %v582_v49  ;;  %v584_v54 = vadd.f32 %v583_v51, %v541_v48  ;;  %v1654_v51 = vld [vmem:[%s2206_s13 + $0x8] sm:$0xff]  }
 0x1d0   :  { %v585_v55 = vpop.f32.mrf.mxu1 }
 0x1d1   :  { %v1366_v57 = vmul.f32 -1.442695, %v584_v54  ;;  %v586_v58 = vadd.f32 %v585_v55, %v543_v52  ;;  %1672 = vpow2.f32 %v1365_v53  ;;  %v1655_v52 = vld [vmem:[%s2206_s13] sm:$0xff]  }
 0x1d2   :  { %v587_v59 = vpop.f32.mrf.mxu1  ;;  %v1388_v53 = vld [vmem:[%s2208_s11] ss:$0 sm:$0xff] }
 0x1d3   :  { %1674 = vpow2.f32 %v1366_v57  ;;  %v1367_v60 = vmul.f32 -1.442695, %v586_v58  ;;  %v588_v61 = vadd.f32 %v587_v59, %v545_v56 }
 0x1d5   :  { %1676 = vpow2.f32 %v1367_v60  ;;  %v1368_v62 = vmul.f32 -1.442695, %v588_v61 }
 0x1d7   :  { %1678 = vpow2.f32 %v1368_v62 }
 0x1de   :  { %v1673_v63 = vpop.eup %1672 }
 0x1df   :  { %v602_v4 = vadd.f32 1.0, %v1673_v63 }
 0x1e0   :  { %v1675_v1 = vpop.eup %1674 }
 0x1e1   :  { %v603_v2 = vadd.f32 1.0, %v1675_v1 }
 0x1e2   :  { %v1677_v3 = vpop.eup %1676 }
 0x1e3   :  { %v604_v5 = vadd.f32 1.0, %v1677_v3  ;;  %1680 = vrcp.f32 %v603_v2 }
 0x1e4   :  { %v1679_v6 = vpop.eup %1678 }
 0x1e5   :  { %1682 = vrcp.f32 %v604_v5  ;;  %v605_v7 = vadd.f32 1.0, %v1679_v6 }
 0x1e6   :  { %1684 = vrcp.f32 %v602_v4 }
 0x1e7   :  { %1686 = vrcp.f32 %v605_v7  ;;  %v1656_v7 = vld [vmem:[%s2207_s12 + $0x8] sm:$0xff]  }
 0x1f0   :  { %v1681_v8 = vpop.eup %1680 }
 0x1f1   :  { %v615_v13 = vmul.f32 %v1681_v8, %v584_v54 }
 0x1f2   :  { %v1683_v9 = vpop.eup %1682 }
 0x1f3   :  { %v1685_v10 = vpop.eup %1684  ;;  %v616_v12 = vmul.f32 %v1683_v9, %v586_v58  ;;  %v1657_v9 = vld [vmem:[%s2207_s12] sm:$0xff]  }
 0x1f4   :  { %v1687_v11 = vpop.eup %1686  ;;  %v614_v15 = vmul.f32 %v1685_v10, %v582_v49  ;;  %v1652_v49 = vld [vmem:[%s2206_s13 + $0x18] sm:$0xff]  }
 0x1f5   :  { %v617_v14 = vmul.f32 %v1687_v11, %v588_v61  ;;  %1522 = vmatpush3.bf16.msra.mxu0 %v1652_v49  ;;  %v1658_v10 = vld [vmem:[%s2209_s15 + $0x18] sm:$0xff]   ;;  %v1659_v11 = vld [vmem:[%s2209_s15 + $0x10] sm:$0xff]  }
 0x1f6   :  { %v618_v17 = vpack.c.bf16 %v616_v12, %v614_v15  ;;  %1523 = vmatprep.subr.bf16.mxu0 %v1728_v0 }
 0x1f7   :  { %v619_v16 = vpack.c.bf16 %v617_v14, %v615_v13 }
 0x1f9   :  { %787 = vmatprep.mubr.bf16.mxu1 %v619_v16  ;;  %1524 = vmatpush3.bf16.msra.mxu0 %v1653_v50  ;;  %v1407_v16 = vld [vmem:[%s2210_s14] ss:$0 sm:$0xff] }
 0x1fa   :  { %788 = vmatmul.mubr.bf16.vlgmr.msra.gmra.mxu1 %v618_v17  ;;  %1525 = vmatprep.subr.bf16.mxu0 %v1728_v0 }
 0x1fb   :  { %1517 = vmatprep.mubr.msk.bf16.mxu1 %vm1729_vm0, %v1728_v0  ;;  %1502 = vmatpush3.bf16.msra.mxu1 %v1644_v18 }
 0x1fc   :  { %1503 = vmatprep.subr.bf16.mxu1 %v1728_v0 }
 0x1fd   :  { %1526 = vmatpush3.bf16.msra.mxu0 %v1654_v51 }
 0x1fe   :  { %1527 = vmatprep.subr.bf16.mxu0 %v1728_v0 }
 0x1ff   :  { %1504 = vmatpush3.bf16.msra.mxu1 %v1645_v19 }
 0x200   :  { %1505 = vmatprep.subr.bf16.mxu1 %v1728_v0 }
 0x201   :  { %1528 = vmatpush3.bf16.msra.mxu0 %v1655_v52 }
 0x202   :  { %1533 = vmatprep.subr.bf16.mxu0 %v1728_v0 }
 0x203   :  { %1506 = vmatpush3.bf16.msra.mxu1 %v1646_v20 }
 0x204   :  { %1507 = vmatprep.subr.bf16.mxu1 %v1728_v0 }
 0x207   :  { %1508 = vmatpush3.bf16.msra.mxu1 %v1647_v21 }
 0x208   :  { %1509 = vmatprep.subr.bf16.mxu1 %v1728_v0 }
 0x20b   :  { %1510 = vmatpush3.bf16.msra.mxu1 %v1648_v22 }
 0x20c   :  { %1511 = vmatprep.subr.bf16.mxu1 %v1728_v0 }
 0x20f   :  { %1512 = vmatpush3.bf16.msra.mxu1 %v1649_v23 }
 0x210   :  { %1513 = vmatprep.subr.bf16.mxu1 %v1728_v0 }
 0x213   :  { %1514 = vmatpush3.bf16.msra.mxu1 %v1650_v24 }
 0x214   :  { %1515 = vmatprep.subr.bf16.mxu1 %v1728_v0 }
 0x217   :  { %1516 = vmatpush3.bf16.msra.mxu1 %v1651_v25 }
 0x218   :  { %1541 = vmatprep.subr.bf16.mxu1 %v1728_v0 }
 0x2ba   :  { %v1450_v26 = vpop.f32.mrf.mxu1 }
 0x2bc   :  { %v1451_v28 = vpop.f32.mrf.mxu1 }
 0x2bd   :  { %v1452_v29 = vadd.f32 %v1451_v28, %v1450_v26 }
 0x2be   :  { %v1453_v30 = vpop.f32.mrf.mxu1 }
 0x2bf   :  { %v790_v31 = vadd.f32 %v1452_v29, %v1369_v27 }
 0x2c0   :  { %v1454_v32 = vpop.f32.mrf.mxu1 }
 0x2c1   :  { %v1386_v33 = vmul.f32 -1.442695, %v790_v31  ;;  %v1455_v34 = vadd.f32 %v1454_v32, %v1453_v30 }
 0x2c3   :  { %1688 = vpow2.f32 %v1386_v33  ;;  %v793_v35 = vadd.f32 %v1455_v34, %v1369_v27 }
 0x2c5   :  { %v1387_v36 = vmul.f32 -1.442695, %v793_v35 }
 0x2c7   :  { %1690 = vpow2.f32 %v1387_v36  ;;  %v1663_v36 = vld [vmem:[%s2211_s17] sm:$0xff]  }
 0x2d0   :  { %v1689_v38 = vpop.eup %1688 }
 0x2d1   :  { %v802_v40 = vadd.f32 1.0, %v1689_v38  ;;  %v1410_v38 = vld [vmem:[%s2212_s16] ss:$0 sm:$0xff] }
 0x2d3   :  { %1692 = vrcp.f32 %v802_v40 }
 0x2d4   :  { %v1691_v41 = vpop.eup %1690 }
 0x2d5   :  { %v803_v42 = vadd.f32 1.0, %v1691_v41 }
 0x2d7   :  { %1694 = vrcp.f32 %v803_v42 }
 0x2e0   :  { %v1693_v44 = vpop.eup %1692 }
 0x2e1   :  { %v808_v46 = vmul.f32 %v1693_v44, %v790_v31 }
 0x2e4   :  { %v1695_v45 = vpop.eup %1694 }
 0x2e5   :  { %v809_v47 = vmul.f32 %v1695_v45, %v793_v35  ;;  %v1662_v35 = vld [vmem:[%s2211_s17 + $0x8] sm:$0xff]  }
 0x2e7   :  { %v810_v48 = vpack.c.bf16 %v809_v47, %v808_v46 }
 0x2e9   :  { %1518 = vmatmul.mubr.bf16.vlgmr.msra.gmra.mxu1 %v810_v48 }
 0x2ea   :  { %1549 = vmatprep.mubr.msk.bf16.mxu1 %vm1729_vm0, %v1728_v0  ;;  %1542 = vmatpush3.bf16.msra.mxu1 %v1658_v10 }
 0x2eb   :  { %1543 = vmatprep.subr.bf16.mxu1 %v1728_v0 }
 0x2ee   :  { %1544 = vmatpush3.bf16.msra.mxu1 %v1659_v11 }
 0x2ef   :  { %1545 = vmatprep.subr.bf16.mxu1 %v1728_v0 }
 0x2f2   :  { %1546 = vmatpush3.bf16.msra.mxu1 %v1660_v37 }
 0x2f3   :  { %1547 = vmatprep.subr.bf16.mxu1 %v1728_v0 }
 0x2f6   :  { %1548 = vmatpush3.bf16.msra.mxu1 %v1661_v39  ;;  %v1424_v39 = vld [vmem:[%s2215_s19] ss:$0 sm:$0xff] }
 0x3a9   :  { %v916_v54 = vpop.f32.mrf.mxu1 }
 0x3aa   :  { %v917_v55 = vadd.f32 %v1388_v53, %v916_v54 }
 0x3ab   :  { %v1519_v56 = vpop.f32.mrf.mxu1 }
 0x3ac   :  { %v1397_v57 = vmul.f32 -1.442695, %v917_v55 }
 0x3ad   :  { %v919_v58 = vpop.f32.mrf.mxu1 }
 0x3ae   :  { %1696 = vpow2.f32 %v1397_v57  ;;  %v920_v59 = vadd.f32 %v1388_v53, %v919_v58  ;;  %v26_v57 = vstv %s2213_s20  ;;  %v1418_v58 = vld [vmem:[%s2214_s18] ss:$0 sm:$0xff] }
 0x3af   :  { %v1520_v60 = vpop.f32.mrf.mxu1  ;;  %27 = vst [vmem:[#allocation2] sm:$0x1] %v26_v57 }
 0x3b0   :  { %v1398_v61 = vmul.f32 -1.442695, %v920_v59 }
 0x3b2   :  { %1698 = vpow2.f32 %v1398_v61 }
 0x3bb   :  { %v1697_v62 = vpop.eup %1696 }
 0x3bc   :  { %v929_v63 = vadd.f32 1.0, %v1697_v62 }
 0x3be   :  { %1700 = vrcp.f32 %v929_v63 }
 0x3bf   :  { %v1699_v1 = vpop.eup %1698 }
 0x3c0   :  { %v930_v2 = vadd.f32 1.0, %v1699_v1 }
 0x3c2   :  { %1702 = vrcp.f32 %v930_v2 }
 0x3cb   :  { %v1701_v3 = vpop.eup %1700 }
 0x3cc   :  { %v935_v5 = vmul.f32 %v1701_v3, %v917_v55 }
 0x3cf   :  { %v1703_v4 = vpop.eup %1702 }
 0x3d0   :  { %v936_v6 = vmul.f32 %v1703_v4, %v920_v59 }
 0x3d2   :  { %v937_v8 = vpack.c.bf16 %v936_v6, %v935_v5 }
 0x3d4   :  { %1530 = vmatmul.mubr.msk.bf16.vlgmr.msra.gmra.mxu0 %vm200_vm3, %v937_v8 }
 0x3d5   :  { %1534 = vmatpush3.bf16.msra.mxu0 %v1656_v7  ;;  %1537 = vmatprep.mubr.msk.bf16.mxu0 %vm1729_vm0, %v1728_v0 }
 0x3d6   :  { %1535 = vmatprep.subr.bf16.mxu0 %v1728_v0 }
 0x3d9   :  { %1536 = vmatpush3.bf16.msra.mxu0 %v1657_v9 }
 0x3da   :  { %1553 = vmatprep.subr.bf16.mxu0 %v1728_v0 }
 0x3dc   :  { %1538 = vmatmul.mubr.msk.bf16.vlgmr.msra.gmra.mxu0 %vm101_vm1, %v245_v43 }
 0x3dd   :  { %1557 = vmatprep.mubr.msk.bf16.mxu0 %vm1729_vm0, %v1728_v0  ;;  %1554 = vmatpush3.bf16.msra.mxu0 %v1662_v35 }
 0x3de   :  { %1555 = vmatprep.subr.bf16.mxu0 %v1728_v0 }
 0x3e1   :  { %1556 = vmatpush3.bf16.msra.mxu0 %v1663_v36 }
 0x494   :  { %v1011_v43 = vpop.f32.mrf.mxu0 }
 0x496   :  { %v1531_v12 = vpop.f32.mrf.mxu0 }
 0x498   :  { %v1014_v13 = vpop.f32.mrf.mxu0 }
 0x49a   :  { %v1532_v14 = vpop.f32.mrf.mxu0 }
 0x49c   :  { %v1067_v15 = vpop.f32.mrf.mxu0 }
 0x49d   :  { %v1068_v17 = vadd.f32 %v1067_v15, %v1011_v43 }
 0x49e   :  { %v1539_v18 = vpop.f32.mrf.mxu0 }
 0x49f   :  { %v1081_v19 = vadd.f32 %v1407_v16, %v1068_v17  ;;  %v1425_v17 = vld [vmem:[#allocation2] ss:$0 sm:$0xff] }
 0x4a0   :  { %v1070_v20 = vpop.f32.mrf.mxu0 }
 0x4a1   :  { %v1408_v21 = vmul.f32 -1.442695, %v1081_v19  ;;  %v1071_v22 = vadd.f32 %v1070_v20, %v1014_v13 }
 0x4a2   :  { %v1540_v23 = vpop.f32.mrf.mxu0 }
 0x4a3   :  { %1704 = vpow2.f32 %v1408_v21  ;;  %v1082_v24 = vadd.f32 %v1407_v16, %v1071_v22 }
 0x4a5   :  { %v1409_v25 = vmul.f32 -1.442695, %v1082_v24 }
 0x4a7   :  { %1706 = vpow2.f32 %v1409_v25 }
 0x4b0   :  { %v1705_v26 = vpop.eup %1704 }
 0x4b1   :  { %v1089_v27 = vadd.f32 1.0, %v1705_v26 }
 0x4b3   :  { %1708 = vrcp.f32 %v1089_v27 }
 0x4b4   :  { %v1707_v28 = vpop.eup %1706 }
 0x4b5   :  { %v1090_v29 = vadd.f32 1.0, %v1707_v28 }
 0x4b7   :  { %1710 = vrcp.f32 %v1090_v29 }
 0x4c0   :  { %v1709_v30 = vpop.eup %1708 }
 0x4c1   :  { %v1095_v32 = vmul.f32 %v1709_v30, %v1081_v19 }
 0x4c4   :  { %v1711_v31 = vpop.eup %1710 }
 0x4c5   :  { %v1096_v33 = vmul.f32 %v1711_v31, %v1082_v24 }
 0x4c7   :  { %v1097_v34 = vpack.c.bf16 %v1096_v33, %v1095_v32 }
 0x4c9   :  { %1550 = vmatmul.mubr.msk.bf16.vlgmr.msra.gmra.mxu1 %vm200_vm3, %v1097_v34 }
 0x589   :  { %v1174_v40 = vpop.f32.mrf.mxu1 }
 0x58a   :  { %v1175_v41 = vadd.f32 %v1410_v38, %v1174_v40 }
 0x58b   :  { %v1551_v42 = vpop.f32.mrf.mxu1 }
 0x58c   :  { %v1416_v44 = vmul.f32 -1.442695, %v1175_v41 }
 0x58d   :  { %v1177_v45 = vpop.f32.mrf.mxu1 }
 0x58e   :  { %1712 = vpow2.f32 %v1416_v44  ;;  %v1178_v46 = vadd.f32 %v1410_v38, %v1177_v45 }
 0x58f   :  { %v1552_v47 = vpop.f32.mrf.mxu1 }
 0x590   :  { %v1417_v48 = vmul.f32 -1.442695, %v1178_v46 }
 0x592   :  { %1714 = vpow2.f32 %v1417_v48 }
 0x59b   :  { %v1713_v0 = vpop.eup %1712 }
 0x59c   :  { %v1187_v49 = vadd.f32 1.0, %v1713_v0 }
 0x59e   :  { %1716 = vrcp.f32 %v1187_v49 }
 0x59f   :  { %v1715_v50 = vpop.eup %1714 }
 0x5a0   :  { %v1188_v51 = vadd.f32 1.0, %v1715_v50 }
 0x5a2   :  { %1718 = vrcp.f32 %v1188_v51 }
 0x5ab   :  { %v1717_v52 = vpop.eup %1716 }
 0x5ac   :  { %v1193_v54 = vmul.f32 %v1717_v52, %v1175_v41 }
 0x5af   :  { %v1719_v53 = vpop.eup %1718 }
 0x5b0   :  { %v1194_v55 = vmul.f32 %v1719_v53, %v1178_v46 }
 0x5b2   :  { %v1195_v56 = vpack.c.bf16 %v1194_v55, %v1193_v54 }
 0x5b4   :  { %1558 = vmatmul.mubr.msk.bf16.vlgmr.msra.gmra.mxu0 %vm101_vm1, %v1195_v56 }
 0x674   :  { %v1256_v59 = vpop.f32.mrf.mxu0 }
 0x675   :  { %v1257_v60 = vadd.f32 %v1418_v58, %v1256_v59 }
 0x676   :  { %v1559_v61 = vpop.f32.mrf.mxu0 }
 0x677   :  { %v1422_v62 = vmul.f32 -1.442695, %v1257_v60 }
 0x678   :  { %v1259_v63 = vpop.f32.mrf.mxu0 }
 0x679   :  { %1720 = vpow2.f32 %v1422_v62  ;;  %v1260_v1 = vadd.f32 %v1418_v58, %v1259_v63 }
 0x67a   :  { %v1560_v2 = vpop.f32.mrf.mxu0 }
 0x67b   :  { %v1423_v3 = vmul.f32 -1.442695, %v1260_v1 }
 0x67d   :  { %1722 = vpow2.f32 %v1423_v3 }
 0x686   :  { %v1721_v4 = vpop.eup %1720 }
 0x687   :  { %v1269_v5 = vadd.f32 1.0, %v1721_v4 }
 0x689   :  { %1724 = vrcp.f32 %v1269_v5 }
 0x68a   :  { %v1723_v6 = vpop.eup %1722 }
 0x68b   :  { %v1270_v7 = vadd.f32 1.0, %v1723_v6 }
 0x68d   :  { %1726 = vrcp.f32 %v1270_v7 }
 0x696   :  { %v1725_v8 = vpop.eup %1724 }
 0x697   :  { %v1275_v10 = vmul.f32 %v1725_v8, %v1257_v60 }
 0x69a   :  { %v1727_v9 = vpop.eup %1726 }
 0x69b   :  { %v1276_v11 = vmul.f32 %v1727_v9, %v1260_v1 }
 0x69d   :  { %v1277_v37 = vpack.c.bf16 %v1276_v11, %v1275_v10 }
 0x69f   :  { %v1279_v43 = vunpack.c.l.bf16 %v1277_v37  ;;  %v1280_v12 = vunpack.c.h.bf16 %v1277_v37 }
 0x6a1   :  { %v1287_v13 = vmul.f32 %v1424_v39, %v1279_v43  ;;  %v1288_v15 = vmul.f32 %v1424_v39, %v1280_v12 }
 0x6a3   :  { %v1290_v14 = vsel %vm1289_vm5, %v1287_v13, 0.0  ;;  %v1293_v16 = vsel %vm1289_vm5, %v1288_v15, 0.0 }
 0x6a4   :  { %1291 = vadd.xlane.f32.xlu0 %v1290_v14 }
 0x6a8   :  { %1294 = vadd.xlane.f32.xlu0 %v1293_v16 }
 0x72d   :  { %v1292_v18 = vpop.xlane.xlu0 %1291 }
 0x72e   :  { %v1303_v19 = vadd.f32 %v1425_v17, %v1292_v18 }
 0x730   :  { %1306 = vst.msk [vmem:[%s2216_s21] sm:$0xff] %vm1305_vm6, %v1303_v19 }
 0x731   :  { %v1295_v20 = vpop.xlane.xlu0 %1294 }
 0x732   :  { %v1304_v21 = vadd.f32 %v1425_v17, %v1295_v20 }
 0x734   :  { %1307 = vst.msk [vmem:[%s2216_s21 + $0x8] sm:$0xff] %vm1305_vm6, %v1304_v21 }

</bundles_post_ra>
